<compile_context>
chip_gen: v6e
topology: v6e:2x2x1
jax: 0.10.0
libtpu: 0.0.40
codegen_flags: <defaults>
</compile_context>

<pallas_src>
import functools

import jax
import jax.numpy as jnp
from jax.experimental import pallas as pl
from jax.experimental.pallas import tpu as pltpu


# --------------------------- fused (per-batch-tile) path ---------------------

def _se_fused_kernel(x_ref, w1_ref, b1_ref, w2_ref, b2_ref, o_ref, *, inv_hw):
    # x_ref: (TN, C, HW)   w1_ref: (C, Cr) f32   b1_ref: (1, Cr) f32
    # w2_ref: (Cr, C) f32  b2_ref: (1, C) f32    o_ref: (TN, C, HW)
    x = x_ref[...]                                               # native dtype

    # Squeeze: global average pool.  Sum in f32, scale by 1/(H*W).
    pooled = jnp.sum(x, axis=-1, dtype=jnp.float32) * inv_hw     # (TN, C)

    # fc1 (1x1 conv) + ReLU; fc2 (1x1 conv) + sigmoid.  Weights are already
    # f32 and VMEM-resident across grid steps -> no per-step casts.
    h = jnp.maximum(
        jnp.dot(pooled, w1_ref[...], preferred_element_type=jnp.float32)
        + b1_ref[...], 0.0)                                      # (TN, Cr)
    s = jax.nn.sigmoid(
        jnp.dot(h, w2_ref[...], preferred_element_type=jnp.float32)
        + b2_ref[...])                                           # (TN, C)

    # Excite: broadcast multiply over the spatial axis in native dtype.
    o_ref[...] = (x * s.astype(x.dtype)[:, :, None]).astype(o_ref.dtype)


# ------------------- two-pass spatial-tiled fallback kernels -----------------

def _se_scale_kernel(x_ref, w1_ref, b1_ref, w2_ref, b2_ref, s_ref, acc_ref, *,
                     inv_hw, hw_total, thw):
    # Pass 1: accumulate per-channel sums over HW tiles; at the last tile run
    # the tiny FC -> ReLU -> FC -> sigmoid and emit scale of shape (1, C, 1).
    h = pl.program_id(1)

    @pl.when(h == 0)
    def _():
        acc_ref[...] = jnp.zeros_like(acc_ref)

    x = x_ref[...]                                               # (1, C, THW)
    if hw_total % thw != 0:
        # Mask garbage lanes of the partial last spatial tile.
        lane = jax.lax.broadcasted_iota(jnp.int32, x.shape, 2)
        x = jnp.where(h * thw + lane < hw_total, x, jnp.zeros_like(x))
    acc_ref[...] += jnp.sum(x, axis=-1, dtype=jnp.float32)       # (1, C)

    @pl.when(h == pl.num_programs(1) - 1)
    def _():
        pooled = acc_ref[...] * inv_hw
        hid = jnp.maximum(
            jnp.dot(pooled, w1_ref[...], preferred_element_type=jnp.float32)
            + b1_ref[...], 0.0)
        s = jax.nn.sigmoid(
            jnp.dot(hid, w2_ref[...], preferred_element_type=jnp.float32)
            + b2_ref[...])                                       # (1, C)
        s_ref[...] = s[:, :, None]                               # (1, C, 1)


def _se_excite_kernel(x_ref, s_ref, o_ref):
    # Pass 2: out = x * scale, streamed over (batch, HW-tile).
    x = x_ref[...]                                               # (1, C, THW)
    o_ref[...] = (x * s_ref[...].astype(x.dtype)).astype(o_ref.dtype)


# ------------------------------- tiling helpers ------------------------------

def _vmem_budgets():
    """(double-buffer budget, scoped vmem limit) derived from chip VMEM."""
    cap = 64 << 20
    try:
        info = pltpu.get_tpu_info()
        cap = int(getattr(info, "vmem_capacity_bytes", cap) or cap)
    except Exception:
        pass
    if cap <= (64 << 20):              # v7x-class: 64 MiB per TensorCore
        return 40 << 20, 56 << 20
    return 72 << 20, 100 << 20         # v5e / v6e: 128 MiB


def _pick_batch_tile(n, per_sample_bytes, budget_bytes):
    """Largest batch tile whose double-buffered in+out slabs fit the budget.

    Returns 0 when even one sample does not fit (use the spatial fallback).
    TN need not divide N; the partial last block is safe (rows independent,
    OOB output rows dropped).  Capped at ceil(N/2) so there are >=2 grid
    steps for megacore sharding on v7x.
    """
    max_tn = budget_bytes // (4 * per_sample_bytes)   # 2 bufs x (in + out)
    if max_tn < 1:
        return 0
    tn = min(n, int(max_tn))
    if tn >= n and n > 1:
        tn = (n + 1) // 2
    return tn


def _pick_spatial_tile(hw, c, itemsize, budget_bytes):
    """Largest multiple-of-128 spatial tile whose excite-pass slabs fit."""
    max_lanes = budget_bytes // (4 * c * itemsize)
    thw = max(128, (int(max_lanes) // 128) * 128)
    return min(thw, hw)


# ---------------------------------- wrapper ----------------------------------

def squeeze_excitation(x_nchw, w1, b1, w2, b2, *,
                       buffer_budget_bytes=None, vmem_limit_bytes=None):
    """x_nchw: (N, C, H, W); w1: (Cr, C); b1: (Cr,); w2: (C, Cr); b2: (C,)."""
    N, C, H, W = x_nchw.shape
    Cr = w1.shape[0]
    HW = H * W

    auto_budget, auto_limit = _vmem_budgets()
    budget = auto_budget if buffer_budget_bytes is None else buffer_budget_bytes
    vmem_limit = auto_limit if vmem_limit_bytes is None else vmem_limit_bytes

    x_flat = x_nchw.reshape(N, C, HW)
    itemsize = x_flat.dtype.itemsize

    # 1x1-conv weights pre-transposed + pre-cast once (f32, VMEM-resident).
    w1_t = jnp.transpose(w1).astype(jnp.float32)        # (C, Cr)
    w2_t = jnp.transpose(w2).astype(jnp.float32)        # (Cr, C)
    b1_2d = b1.reshape(1, Cr).astype(jnp.float32)
    b2_2d = b2.reshape(1, C).astype(jnp.float32)

    inv_hw = 1.0 / HW
    weight_bytes = (C * Cr + Cr * C + Cr + C) * 4
    transcendentals = N * C

    per_sample_bytes = C * HW * itemsize
    TN = _pick_batch_tile(N, per_sample_bytes, budget)

    if TN >= 1:
        # ---------------- fused path: grid over batch tiles ----------------
        kernel = functools.partial(_se_fused_kernel, inv_hw=inv_hw)
        out_flat = pl.pallas_call(
            kernel,
            out_shape=jax.ShapeDtypeStruct((N, C, HW), x_flat.dtype),
            grid=(pl.cdiv(N, TN),),
            in_specs=[
                # x streamed / double-buffered over the batch grid axis.
                pl.BlockSpec((TN, C, HW), lambda n: (n, 0, 0)),
                # Weights/biases: constant index_map -> resident across steps.
                pl.BlockSpec((C, Cr), lambda n: (0, 0)),
                pl.BlockSpec((1, Cr), lambda n: (0, 0)),
                pl.BlockSpec((Cr, C), lambda n: (0, 0)),
                pl.BlockSpec((1, C), lambda n: (0, 0)),
            ],
            out_specs=pl.BlockSpec((TN, C, HW), lambda n: (n, 0, 0)),
            compiler_params=pltpu.CompilerParams(
                dimension_semantics=("parallel",),
                vmem_limit_bytes=vmem_limit,
            ),
            cost_estimate=pl.CostEstimate(
                flops=4 * N * C * Cr + 2 * N * C * HW,
                transcendentals=transcendentals,
                bytes_accessed=2 * N * C * HW * itemsize + weight_bytes),
        )(x_flat, w1_t, b1_2d, w2_t, b2_2d)
        return out_flat.reshape(N, C, H, W)

    # -------- two-pass spatial-tiled fallback (huge C*HW per sample) --------
    THW = _pick_spatial_tile(HW, C, itemsize, budget)
    hw_grid = pl.cdiv(HW, THW)

    scale_kernel = functools.partial(
        _se_scale_kernel, inv_hw=inv_hw, hw_total=HW, thw=THW)
    scale = pl.pallas_call(
        scale_kernel,
        out_shape=jax.ShapeDtypeStruct((N, C, 1), jnp.float32),
        grid=(N, hw_grid),
        in_specs=[
            pl.BlockSpec((1, C, THW), lambda n, h: (n, 0, h)),
            pl.BlockSpec((C, Cr), lambda n, h: (0, 0)),
            pl.BlockSpec((1, Cr), lambda n, h: (0, 0)),
            pl.BlockSpec((Cr, C), lambda n, h: (0, 0)),
            pl.BlockSpec((1, C), lambda n, h: (0, 0)),
        ],
        out_specs=pl.BlockSpec((1, C, 1), lambda n, h: (n, 0, 0)),
        scratch_shapes=[pltpu.VMEM((1, C), jnp.float32)],
        compiler_params=pltpu.CompilerParams(
            dimension_semantics=("parallel", "arbitrary"),
            vmem_limit_bytes=vmem_limit,
        ),
        cost_estimate=pl.CostEstimate(
            flops=N * C * HW + 4 * N * C * Cr,
            transcendentals=transcendentals,
            bytes_accessed=N * C * HW * itemsize + weight_bytes),
    )(x_flat, w1_t, b1_2d, w2_t, b2_2d)

    out_flat = pl.pallas_call(
        _se_excite_kernel,
        out_shape=jax.ShapeDtypeStruct((N, C, HW), x_flat.dtype),
        grid=(N, hw_grid),
        in_specs=[
            pl.BlockSpec((1, C, THW), lambda n, h: (n, 0, h)),
            pl.BlockSpec((1, C, 1), lambda n, h: (n, 0, 0)),
        ],
        out_specs=pl.BlockSpec((1, C, THW), lambda n, h: (n, 0, h)),
        compiler_params=pltpu.CompilerParams(
            dimension_semantics=("parallel", "parallel"),
            vmem_limit_bytes=vmem_limit,
        ),
        cost_estimate=pl.CostEstimate(
            flops=N * C * HW, transcendentals=0,
            bytes_accessed=2 * N * C * HW * itemsize + N * C * 4),
    )(x_flat, scale)
    return out_flat.reshape(N, C, H, W)


# --------------------------------- reference ---------------------------------

def se_reference(x, w1, b1, w2, b2):
    pooled = jnp.mean(x, axis=(2, 3))                        # (N, C)
    h = jnp.maximum(pooled @ w1.T + b1, 0.0)                 # (N, Cr)
    s = jax.nn.sigmoid(h @ w2.T + b2)                        # (N, C)
    return x * s[:, :, None, None]


if __name__ == "__main__":
    key = jax.random.PRNGKey(0)
    N, C, H, W = 2, 4, 16, 16
    reduction = 4
    Cr = max(1, C // reduction)

    kx, kw1, kb1, kw2, kb2 = jax.random.split(key, 5)
    x = jax.random.normal(kx, (N, C, H, W), dtype=jnp.float32)
    # Deterministic "Conv2d(kernel_size=1)" parameters (weights squeezed to 2D).
    w1 = jax.random.normal(kw1, (Cr, C), dtype=jnp.float32) * 0.1
    b1 = jax.random.normal(kb1, (Cr,), dtype=jnp.float32) * 0.1
    w2 = jax.random.normal(kw2, (C, Cr), dtype=jnp.float32) * 0.1
    b2 = jax.random.normal(kb2, (C,), dtype=jnp.float32) * 0.1

    # 1) Fused path, auto VMEM budget.
    out = jax.block_until_ready(squeeze_excitation(x, w1, b1, w2, b2))
    ref = se_reference(x, w1, b1, w2, b2)
    assert out.shape == (N, C, H, W)
    assert jnp.allclose(out, ref, atol=1e-5, rtol=1e-5), "fused mismatch"

    # 2) Fused path with a partial batch block: N=3, TN=2 (TN does not divide N).
    x3 = jax.random.normal(jax.random.PRNGKey(1), (3, C, H, W), jnp.float32)
    out3 = jax.block_until_ready(
        squeeze_excitation(x3, w1, b1, w2, b2,
                           buffer_budget_bytes=4 * 2 * C * H * W * 4))
    assert jnp.allclose(out3, se_reference(x3, w1, b1, w2, b2),
                        atol=1e-5, rtol=1e-5), "partial-batch mismatch"

    # 3) Spatial-tiled two-pass fallback (forced via a tiny budget) with
    #    HW=144 so the last spatial tile is partial and the mask is exercised.
    xs = jax.random.normal(jax.random.PRNGKey(2), (2, C, 12, 12), jnp.float32)
    outs = jax.block_until_ready(
        squeeze_excitation(xs, w1, b1, w2, b2, buffer_budget_bytes=1024))
    assert jnp.allclose(outs, se_reference(xs, w1, b1, w2, b2),
                        atol=1e-5, rtol=1e-5), "fallback mismatch"

    print("KERNEL_OK")
</pallas_src>

<mosaic_0001>
module attributes {stable_mosaic.version = 11 : i64} {
  func.func @_se_fused_kernel(%arg0: i32, %arg1: memref<1x4x256xf32, #tpu.memory_space<vmem>>, %arg2: memref<4x1xf32, #tpu.memory_space<vmem>>, %arg3: memref<1x1xf32, #tpu.memory_space<vmem>>, %arg4: memref<1x4xf32, #tpu.memory_space<vmem>>, %arg5: memref<1x4xf32, #tpu.memory_space<vmem>>, %arg6: memref<1x4x256xf32, #tpu.memory_space<vmem>>) attributes {dimension_semantics = [#tpu.dimension_semantics<parallel>], iteration_bounds = array<i64: 2>, scalar_prefetch = 0 : i64, scratch_operands = 0 : i64, tpu.core_type = #tpu.core_type<tc>, window_params = [{transform_indices = @transform_0, window_bounds = array<i64: 1, 4, 256>}, {pipeline_mode = #tpu.pipeline_mode<synchronous>, transform_indices = @transform_1, window_bounds = array<i64: 4, 1>}, {pipeline_mode = #tpu.pipeline_mode<synchronous>, transform_indices = @transform_2, window_bounds = array<i64: 1, 1>}, {pipeline_mode = #tpu.pipeline_mode<synchronous>, transform_indices = @transform_3, window_bounds = array<i64: 1, 4>}, {pipeline_mode = #tpu.pipeline_mode<synchronous>, transform_indices = @transform_4, window_bounds = array<i64: 1, 4>}, {transform_indices = @transform_5, window_bounds = array<i64: 1, 4, 256>}]} {
    %c0 = arith.constant 0 : index
    %c0_0 = arith.constant 0 : index
    %c0_1 = arith.constant 0 : index
    %0 = vector.load %arg1[%c0, %c0_0, %c0_1] : memref<1x4x256xf32, #tpu.memory_space<vmem>>, vector<1x4x256xf32>
    %cst = arith.constant dense<0.000000e+00> : vector<1x4xf32>
    %1 = vector.multi_reduction <add>, %0, %cst [2] : vector<1x4x256xf32> to vector<1x4xf32>
    %cst_2 = arith.constant 3.906250e-03 : f32
    %2 = vector.broadcast %cst_2 : f32 to vector<1x4xf32>
    %3 = arith.mulf %1, %2 : vector<1x4xf32>
    %c0_3 = arith.constant 0 : index
    %c0_4 = arith.constant 0 : index
    %4 = vector.load %arg2[%c0_3, %c0_4] : memref<4x1xf32, #tpu.memory_space<vmem>>, vector<4x1xf32>
    %cst_5 = arith.constant dense<0.000000e+00> : vector<1x1xf32>
    %5 = tpu.matmul %3, %4, %cst_5 {dimension_numbers = #tpu.dot_dimension_numbers<[1], [0], [0], [1], [0, 0, 1, 1], [], []>} : vector<1x4xf32>, vector<4x1xf32>, vector<1x1xf32> -> vector<1x1xf32>
    %c0_6 = arith.constant 0 : index
    %c0_7 = arith.constant 0 : index
    %6 = vector.load %arg3[%c0_6, %c0_7] : memref<1x1xf32, #tpu.memory_space<vmem>>, vector<1x1xf32>
    %7 = arith.addf %5, %6 : vector<1x1xf32>
    %cst_8 = arith.constant 0.000000e+00 : f32
    %8 = vector.broadcast %cst_8 : f32 to vector<1x1xf32>
    %9 = arith.maximumf %7, %8 : vector<1x1xf32>
    %c0_9 = arith.constant 0 : index
    %c0_10 = arith.constant 0 : index
    %10 = vector.load %arg4[%c0_9, %c0_10] : memref<1x4xf32, #tpu.memory_space<vmem>>, vector<1x4xf32>
    %cst_11 = arith.constant dense<0.000000e+00> : vector<1x4xf32>
    %11 = tpu.matmul %9, %10, %cst_11 {dimension_numbers = #tpu.dot_dimension_numbers<[1], [0], [0], [1], [0, 0, 1, 1], [], []>} : vector<1x1xf32>, vector<1x4xf32>, vector<1x4xf32> -> vector<1x4xf32>
    %c0_12 = arith.constant 0 : index
    %c0_13 = arith.constant 0 : index
    %12 = vector.load %arg5[%c0_12, %c0_13] : memref<1x4xf32, #tpu.memory_space<vmem>>, vector<1x4xf32>
    %13 = arith.addf %11, %12 : vector<1x4xf32>
    %14 = arith.negf %13 : vector<1x4xf32>
    %15 = math.exp %14 : vector<1x4xf32>
    %cst_14 = arith.constant 1.000000e+00 : f32
    %16 = vector.broadcast %cst_14 : f32 to vector<1x4xf32>
    %17 = arith.addf %16, %15 : vector<1x4xf32>
    %18 = arith.divf %16, %17 : vector<1x4xf32>
    %19 = vector.shape_cast %18 : vector<1x4xf32> to vector<1x4x1xf32>
    %20 = vector.broadcast %19 : vector<1x4x1xf32> to vector<1x4x256xf32>
    %21 = arith.mulf %0, %20 : vector<1x4x256xf32>
    %c0_15 = arith.constant 0 : index
    %c0_16 = arith.constant 0 : index
    %c0_17 = arith.constant 0 : index
    %22 = vector.load %arg6[%c0_15, %c0_16, %c0_17] : memref<1x4x256xf32, #tpu.memory_space<vmem>>, vector<1x4x256xf32>
    tpu.vector_store %arg6[%c0_15, %c0_16, %c0_17], %21 {strides = array<i32>} : memref<1x4x256xf32, #tpu.memory_space<vmem>>, vector<1x4x256xf32>,
    return
  }
  func.func @transform_0(%arg0: i32) -> (i32, i32, i32) {
    %c0_i32 = arith.constant 0 : i32
    %c0_i32_0 = arith.constant 0 : i32
    %c0_i32_1 = arith.constant 0 : i32
    return %arg0, %c0_i32, %c0_i32_0 : i32, i32, i32
  }
  func.func @transform_1(%arg0: i32) -> (i32, i32) {
    %c0_i32 = arith.constant 0 : i32
    %c0_i32_0 = arith.constant 0 : i32
    %c0_i32_1 = arith.constant 0 : i32
    return %c0_i32, %c0_i32_0 : i32, i32
  }
  func.func @transform_2(%arg0: i32) -> (i32, i32) {
    %c0_i32 = arith.constant 0 : i32
    %c0_i32_0 = arith.constant 0 : i32
    %c0_i32_1 = arith.constant 0 : i32
    return %c0_i32, %c0_i32_0 : i32, i32
  }
  func.func @transform_3(%arg0: i32) -> (i32, i32) {
    %c0_i32 = arith.constant 0 : i32
    %c0_i32_0 = arith.constant 0 : i32
    %c0_i32_1 = arith.constant 0 : i32
    return %c0_i32, %c0_i32_0 : i32, i32
  }
  func.func @transform_4(%arg0: i32) -> (i32, i32) {
    %c0_i32 = arith.constant 0 : i32
    %c0_i32_0 = arith.constant 0 : i32
    %c0_i32_1 = arith.constant 0 : i32
    return %c0_i32, %c0_i32_0 : i32, i32
  }
  func.func @transform_5(%arg0: i32) -> (i32, i32, i32) {
    %c0_i32 = arith.constant 0 : i32
    %c0_i32_0 = arith.constant 0 : i32
    %c0_i32_1 = arith.constant 0 : i32
    return %arg0, %c0_i32, %c0_i32_0 : i32, i32, i32
  }
}

</mosaic_0001>

<bundles_post_ra>
// kernel: tpu_custom_call.1
= control target key start
LH: loop header
LB: loop body
LE: loop exit
PB: predicated region body
PF: predicated region fallthrough
CT: control target
= control target key end

     0   :  { %s904_s0 = inlined_call_operand.hbm [shape: f32[2,4,256], index: 0, kind: input, shape index: {}]   ;;  %s905_s1 = inlined_call_operand.vmem [shape: f32[4,1], index: 1, kind: input, shape index: {}]   ;;  %s906_s2 = inlined_call_operand.<no memory space> [shape: f32[1,1], index: 2, kind: input, shape index: {}]   ;;  %s907_s3 = inlined_call_operand.vmem [shape: f32[1,4], index: 3, kind: input, shape index: {}]   ;;  %s908_s4 = inlined_call_operand.vmem [shape: f32[1,4], index: 4, kind: input, shape index: {}]   ;;  %s909_s5 = inlined_call_operand.hbm [shape: f32[2,4,256], index: 5, kind: output, shape index: {}]  }
   0x1   :  { %v10_v0 = vstv %s906_s2 }
   0x2   :  { %11 = vst [vmem:[#allocation2] sm:$0x1] %v10_v0 }
   0x3   :  { %12 = vsyncpa [#allocation4], 0 }
   0x4   :  { %14 = vsyncpa [#allocation4 + $0x1], 0 }
   0x5   :  { %15 = vsyncpa [#allocation5], 0 }
   0x6   :  { %17 = vsyncpa [#allocation5 + $0x1], 0  ;;  %s750_s20 = smov 0   ;;  %s752_s21 = smov 0  }
   0x7   :  { %s754_s22 = smov 0   ;;  %s756_s23 = smov 0  }
   0x8 LB: > { %s771_s2 = sadd.s32 4294967295, %s710_s23   ;;  %s529_s24 = sadd.s32 4294967294, %s710_s23   ;;  %s710_s23 = sphi %s756_s23, %s926_s23   ;;  %s706_s22 = sphi %s754_s22, %s925_s22   ;;  %s702_s21 = sphi %s752_s21, %s924_s21   ;;  %s698_s20 = sphi %s750_s20, %s923_s20  }
   0x9   : > { %s775_s25 = sadd.s32 1, %s710_s23   ;;  %s30_s26 = sadd.s32 1, %s706_s22 }
   0xa   : > { %s27_s27 = ssub.s32 %s710_s23, %s775_s25  ;;  %p37_p0 = scmp.ne.s32.totalorder %s706_s22, %s702_s21 }
   0xb   : > { %p28_p1 = scmp.eq.s32.totalorder %s27_s27, 0  ;;  %p38_p2 = scmp.eq.s32.totalorder %s710_s23, 0 }
   0xc   : > { %p43_p3 = scmp.ne.s32.totalorder %s702_s21, %s698_s20  ;;  %p44_p4 = scmp.eq.s32.totalorder %s771_s2, 0 }
   0xd   : > { %s787_s28 = scalar_select %p28_p1, %s706_s22, %s30_s26  }
   0xe   : > { %p789_p5 = por %p38_p2, %p37_p0  ;;  %p793_p6 = por %p44_p4, %p43_p3 }
   0xf   : > { %p151_p7 = scmp.eq.s32.totalorder %s771_s2, 1  ;;  %p157_p8 = scmp.eq.s32.totalorder %s529_s24, 1 }
  0x10   : > { %s913_s30 = scalar_select %p793_p6, 1, 0 }
  0x11   : > { %p576_p10 = scmp.lt.s32.totalorder %s710_s23, 2  ;;  %p800_p11 = por %p151_p7, %p37_p0 }
  0x12   : > { %p804_p12 = por %p157_p8, %p43_p3  ;;  %s189_s8 = sand.u32 1, %s706_s22  }
  0x13   : > { %s914_s6 = scalar_select %p800_p11, 1, 0 }
  0x14   : > { %s915_s7 = scalar_select %p804_p12, 1, 0 }
  0x15   : > { %s548_s9 = sshll.u32 %s710_s23, 7  ;;  %s532_s10 = sshll.u32 %s189_s8, 3 }
  0x16   : > { %s813_s13 = scalar_lea.hbm %s904_s0, %s548_s9  ;;  %s193_s14 = scalar_lea.vmem [#allocation3], %s532_s10 }
  0x17   : > { %s201_s15 = sshll.u32 %s193_s14, 4  ;;  %p817_p13 = pnand %p576_p10, %p789_p5  ;;  %s821_s15 = int_to_ptr.vmem [resolvable:$true] %s201_s15 }
  0x18   : > { %s190_s17 = scalar_lea.sflag [#allocation4], %s189_s8  ;;  %s618_s18 = scalar_lea.hbm %s813_s13, 128 }
  0x19   : > { %p619_p2 = scmp.ne.s32.totalorder %s813_s13, %s618_s18  ;;  %p620_p3 = pneg %p817_p13 }
  0x1a   : > { %s623_s26 = scalar_lea.hbm %s904_s0, 256  ;;  %p624_p5 = scmp.lt.s32.totalorder %s813_s13, %s904_s0 }
  0x1b   : > { %p621_p4 = pnand %p620_p3, %p619_p2  ;;  %p625_p8 = scmp.lt.s32.totalorder %s623_s26, %s618_s18 }
  0x1d   : > { %p622_p7 = pneg %p621_p4  ;;  %p626_p10 = por %p625_p8, %p624_p5 }
  0x1f   : > { %p627_p9 = pnand %p626_p10, %p622_p7 }
  0x21   : > { %630 = shalt.err (!%p627_p9)
}
  0x22   : > { %s631_s8 = scalar_lea.vmem %s821_s15, 128  ;;  %s712_s9 = smov [#allocation3]  }
  0x23   : > { %p632_p0 = scmp.ne.s32.totalorder %s821_s15, %s631_s8  ;;  %s636_s10 = sshll.u32 %s712_s9, 4  ;;  %s637_s10 = int_to_ptr.vmem [resolvable:$false] %s636_s10 }
  0x24   : > { %s638_s11 = scalar_lea.vmem %s637_s10, 256  ;;  %p639_p4 = scmp.lt.s32.totalorder %s821_s15, %s637_s10 }
  0x25   : > { %p634_p1 = pnand %p632_p0, %p620_p3  ;;  %p640_p12 = scmp.lt.s32.totalorder %s638_s11, %s631_s8 }
  0x27   : > { %p635_p2 = pneg %p634_p1  ;;  %p641_p11 = por %p640_p12, %p639_p4 }
  0x29   : > { %p642_p6 = pnand %p641_p11, %p635_p2 }
  0x2b   : > { %645 = shalt.err (!%p642_p6)
}
  0x2c   : > { %571 = dma.hbm_to_vmem [thread:$0]  (!%p817_p13), %s813_s13, 128, %s821_s15, %s190_s17  }
  0x2d   : > { %p917_p9 = scmp.lt.s32.totalorder %s710_s23, 3  ;;  %p918_p7 = scmp.ge.s32.totalorder %s710_s23, 1 }
  0x2f   : > { %p207_p0 = pnand %p918_p7, %p917_p9 }
  0x30   : > { %s848_s12 = sand.u32 (!%p207_p0), 1, %s702_s21   ;;  %p919_p6 = scmp.ne.s32.totalorder (!%p207_p0), %s913_s30, 0 }
  0x31   : > { %210 = sbr.rel (%p207_p0) target bundleno = 761 (0x2f9), region = 40  ;;  %s536_s14 = sshll.u32 (!%p207_p0), %s848_s12, 3 }
  0x32   : > { %s213_s18 = scalar_lea.sflag (!%p207_p0), [#allocation4], %s848_s12  ;;  %s216_s16 = scalar_lea.vmem (!%p207_p0), [#allocation3], %s536_s14 }
  0x36   : > { %689 = dma.done.wait (%p919_p6), %s213_s18, 128  }
  0x37   : > { %691 = vsyncadd (%p919_p6), %s213_s18, 4294967168  ;;  %vm247_vm0 = vcmask 1043456   ;;  %v243_v1 = vld [vmem:[%s216_s16] sm:$0xff]  ;;  %v713_v6 = vmov 0.0   ;;  %vm714_vm1 = vmmov 0   ;;  %v257_v8 = vlaneseq  ;;  %s549_s26 = sshll.u32 %s771_s2, 7 }
  0x38   : > { %v245_v2 = vcombine.high %v243_v1, %v243_v1  ;;  %v248_v3 = vsel %vm247_vm0, %v243_v1, 0.0  ;;  %554 = vmatprep.subr.mxu0 %v713_v6  ;;  %v254_v7 = vld [vmem:[%s905_s1] sm:$0xf]  ;;  %559 = vmatprep.subr.mxu1 %v713_v6  ;;  %vm263_vm2 = vcmask 31744   ;;  %vm346_vm3 = vcmask 1040384   ;;  %s242_s27 = scalar_lea.vmem [#allocation6], %s536_s14  ;;  %s457_s10 = scalar_lea.hbm %s909_s5, %s549_s26 }
  0x39   : > { %555 = vmatpush3.msk.msra.mxu0 %vm247_vm0, %v254_v7  ;;  %556 = vmatprep.mubr.msk.f32.mxu0 %vm714_vm1, %v713_v6  ;;  %v258_v9 = vand.u32 127, %v257_v8  ;;  %v260_v10 = vshrl.u32 %v257_v8, 7  ;;  %v340_v15 = vld [vmem:[%s907_s3] sm:$0x1]  ;;  %vm342_vm4 = vcmask 7168   ;;  %s459_s29 = sshll.u32 %s242_s27, 4  ;;  %s460_s29 = int_to_ptr.vmem [resolvable:$true] %s459_s29 }
  0x3a   : > { %v249_v4 = vsel %vm247_vm0, %v245_v2, 0.0  ;;  %561 = vmatprep.mubr.msk.f32.mxu1 %vm714_vm1, %v713_v6  ;;  %560 = vmatpush3.msk.msra.mxu1 %vm346_vm3, %v340_v15  ;;  %v255_v16 = vld [vmem:[#allocation2] sm:$0x1]  ;;  %v715_v31 = vmov 839922192   ;;  %s445_s11 = scalar_lea.sflag [#allocation5], %s848_s12 }
  0x3b   : > { %v250_v5 = vadd.f32 %v249_v4, %v248_v3  ;;  %v261_v11 = vsub.s32 %v258_v9, %v260_v10  ;;  %v341_v21 = vld [vmem:[%s908_s4] sm:$0x1]  ;;  %v428_v28 = vsub.s32 0, %v260_v10  ;;  %v435_v32 = vunpack.c.l.s4 %v715_v31  ;;  %s646_s18 = scalar_lea.vmem %s460_s29, 128  ;;  %p920_p12 = scmp.ne.s32.totalorder %s914_s6, 0 }
  0x3c   : > { %p647_p11 = scmp.ne.s32.totalorder %s460_s29, %s646_s18  ;;  %s716_s16 = smov [#allocation6]  }
  0x3d   : > { %251 = vadd.xlane.f32.xlu0 %v250_v5  ;;  %v436_v33 = vunpack.c.0.s8 %v435_v32  ;;  %s650_s13 = sshll.u32 %s716_s16, 4  ;;  %s651_s13 = int_to_ptr.vmem [resolvable:$false] %s650_s13 }
  0x3e   : > { %p648_p13 = pnand %p647_p11, %p920_p12  ;;  %s652_s2 = scalar_lea.vmem %s651_s13, 256 }
  0x3f   : > { %v439_v34 = vsub.s32 %v436_v33, %v260_v10  ;;  %p653_p3 = scmp.lt.s32.totalorder %s460_s29, %s651_s13  ;;  %p654_p5 = scmp.lt.s32.totalorder %s652_s2, %s646_s18 }
  0x40   : > { %p649_p1 = pneg %p648_p13 }
  0x41   : > { %p655_p8 = por %p654_p5, %p653_p3 }
  0x43   : > { %p656_p10 = pnand %p655_p8, %p649_p1 }
  0xc6   : > { %v252_v12 = vpop.xlane.xlu0 %251 }
  0xc7   : > { %v253_v13 = vmul.f32 0.00390625, %v252_v12 }
  0xc9   : > { %v262_v14 = vrot.slane %v253_v13, %v261_v11 }
  0xcb   : > { %557 = vmatmul.mubr.msk.f32.vlgmr.msra.gmra.mxu0 %vm263_vm2, %v262_v14 }
 0x18b   : > { %v335_v17 = vpop.f32.mrf.mxu0 }
 0x18c   : > { %v336_v18 = vadd.f32 %v335_v17, %v255_v16 }
 0x18d   : > { %v558_v19 = vpop.f32.mrf.mxu0 }
 0x18e   : > { %v339_v20 = vmax.f32 %v336_v18, 0.0 }
 0x190   : > { %562 = vmatmul.mubr.msk.f32.vlgmr.msra.gmra.mxu1 %vm342_vm4, %v339_v20 }
 0x250   : > { %v416_v22 = vpop.f32.mrf.mxu1 }
 0x251   : > { %v417_v23 = vadd.f32 %v416_v22, %v341_v21 }
 0x252   : > { %v563_v24 = vpop.f32.mrf.mxu1 }
 0x253   : > { %v542_v25 = vmul.f32 -1.442695, %v417_v23 }
 0x255   : > { %614 = vpow2.f32 %v542_v25 }
 0x262   : > { %v615_v26 = vpop.eup %614 }
 0x263   : > { %v423_v27 = vadd.f32 1.0, %v615_v26 }
 0x265   : > { %616 = vrcp.f32 %v423_v27 }
 0x272   : > { %v617_v29 = vpop.eup %616 }
 0x273   : > { %v429_v30 = vrot.slane %v617_v29, %v428_v28 }
 0x275   : > { %431 = vbcast.lane.b32.xlu0 %v429_v30, 256 }
 0x2e7   : > { %v432_v35 = vpop.permute.xlu0 %431 }
 0x2e8   : > { %v440_v36 = vrot.slane %v432_v35, %v439_v34 }
 0x2ea   : > { %v442_v37 = vmul.f32 %v440_v36, %v243_v1 }
 0x2ec   : > { %443 = vst [vmem:[%s242_s27] sm:$0xff] %v442_v37 }
 0x2ed   : > { %659 = shalt.err (!%p656_p10)
}
 0x2ee   : > { %s660_s14 = scalar_lea.hbm %s457_s10, 128  ;;  %s664_s30 = scalar_lea.hbm %s909_s5, 256 }
 0x2ef   : > { %p661_p2 = scmp.ne.s32.totalorder %s457_s10, %s660_s14  ;;  %p665_p7 = scmp.lt.s32.totalorder %s457_s10, %s909_s5 }
 0x2f0   : > { %p666_p0 = scmp.lt.s32.totalorder %s664_s30, %s660_s14 }
 0x2f1   : > { %p662_p4 = pnand %p661_p2, %p920_p12 }
 0x2f2   : > { %p667_p6 = por %p666_p0, %p665_p7 }
 0x2f3   : > { %p663_p9 = pneg %p662_p4 }
 0x2f5   : > { %p668_p11 = pnand %p667_p6, %p663_p9 }
 0x2f7   : > { %671 = shalt.err (!%p668_p11)
}
 0x2f8   : > { %566 = dma.vmem_to_hbm [thread:$0]  (%p920_p12), %s460_s29, 128, %s457_s10, %s445_s11  }
 0x2f9 PF: > { %s471_s24 = sand.u32 1, %s698_s20   ;;  %p921_p13 = scmp.ne.s32.totalorder %s915_s7, 0 }
 0x2fa   : > { %p922_p1 = scmp.ge.s32.totalorder %s710_s23, 2  ;;  %s472_s26 = scalar_lea.sflag [#allocation5], %s471_s24 }
 0x2fc   : > { %p573_p3 = pnand %p922_p1, %p921_p13 }
 0x2fe   : > { %p574_p5 = pneg %p573_p3 }
 0x300   : > { %693 = dma.done.wait (%p574_p5), %s472_s26, 128  }
 0x301   : > { %695 = vsyncadd (%p574_p5), %s472_s26, 4294967168  ;;  %p20_p8 = scmp.ge.s32.totalorder %s775_s25, 4   ;;  %s923_s20 = smov %s702_s21 }
 0x302   : > { %s924_s21 = smov %s706_s22  ;;  %s925_s22 = smov %s787_s28 }
 0x303   : > { %s926_s23 = smov %s775_s25  ;;  %22 = sbr.rel (!%p20_p8) target bundleno = 8 (0x8), region = 85 }
 0x308   :  { %477 = vsyncpa [#allocation4], 1 }
 0x309   :  { %479 = vsyncpa [#allocation4 + $0x1], 1 }
 0x30a   :  { %480 = vsyncpa [#allocation5], 1 }
 0x30b   :  { %482 = vsyncpa [#allocation5 + $0x1], 1 }

</bundles_post_ra>
